<compile_context>
chip_gen: v7x
topology: tpu7x:2x2x1
jax: 0.10.0
libtpu: 0.0.40
codegen_flags: <defaults>
</compile_context>

<pallas_src>
import functools

import jax
import jax.numpy as jnp
from jax.experimental import pallas as pl
from jax.experimental.pallas import tpu as pltpu


def _round_up(n, m):
    return ((n + m - 1) // m) * m


def _center_loss_tile_kernel(x_ref, c_ref, psum_ref, *, batch, tile_rows):
    """Grid = (cdiv(B, TB),).  Step t handles rows [t*TB, (t+1)*TB).

    x_ref    : (TB, D) native dtype, VMEM -- rows of x
    c_ref    : (TB, D) native dtype, VMEM -- centers[labels[row]] (pre-gathered)
    psum_ref : (1, 1)  f32,          VMEM -- this tile's partial sum
    """
    t = pl.program_id(0)

    x = x_ref[...].astype(jnp.float32)                      # upcast on VPU (free, mem-bound)
    c = c_ref[...].astype(jnp.float32)
    diff = x - c                                            # (TB, D)  VPU
    d = jnp.sum(diff * diff, axis=-1, keepdims=True)        # (TB, 1)  lane reduce (XLU)
    d = jnp.clip(d, 1e-12, 1.0e12)                          # clamp(min=1e-12, max=1e12)

    # Zero contributions from padded rows of the last (partial) tile; the
    # padding region of the VMEM buffer holds undefined data.
    row = t * tile_rows + jax.lax.broadcasted_iota(jnp.int32, (tile_rows, 1), 0)
    d = jnp.where(row < batch, d, 0.0)

    psum_ref[...] = jnp.sum(d, keepdims=True)               # (1, 1) per-tile partial


def center_loss(x, labels, centers, *, tile_rows=512):
    """x: (B, D) float, labels: (B,) int, centers: (C, D) float -> scalar f32."""
    B, D = x.shape
    C = centers.shape[0]

    labels = labels.astype(jnp.int32)
    # Review option (b): pre-gather the assigned center per sample once in the
    # wrapper.  Keeps centers HBM traffic at B*D bytes and lets the kernel
    # stream dense (TB, D) tiles for both operands.
    c_gathered = jnp.take(centers, labels, axis=0)           # (B, D)

    # Tile sizing: multiple of 8 sublanes, capped so double-buffered inputs
    # stay a few MiB each (comfortably inside v7x's 64 MiB VMEM).
    bytes_per_row = D * max(jnp.dtype(x.dtype).itemsize,
                            jnp.dtype(centers.dtype).itemsize)
    tb_cap = max(8, ((8 << 20) // max(bytes_per_row, 1)) // 8 * 8)
    tb = max(8, min(tile_rows, tb_cap, _round_up(B, 8)))
    num_tiles = pl.cdiv(B, tb)

    kernel = functools.partial(_center_loss_tile_kernel, batch=B, tile_rows=tb)

    cost = pl.CostEstimate(
        flops=3 * B * D,
        transcendentals=0,
        bytes_accessed=B * D * jnp.dtype(x.dtype).itemsize
        + B * D * jnp.dtype(centers.dtype).itemsize
        + 4 * num_tiles,
    )

    partials = pl.pallas_call(
        kernel,
        out_shape=jax.ShapeDtypeStruct((num_tiles, 1), jnp.float32),
        grid_spec=pltpu.PrefetchScalarGridSpec(
            num_scalar_prefetch=0,
            grid=(num_tiles,),
            in_specs=[
                pl.BlockSpec((tb, D), lambda t: (t, 0)),      # x rows
                pl.BlockSpec((tb, D), lambda t: (t, 0)),      # gathered centers
            ],
            # One independent partial sum per grid step: no serial accumulator.
            out_specs=pl.BlockSpec((1, 1), lambda t: (t, 0)),
        ),
        compiler_params=pltpu.CompilerParams(
            # Tiles are independent -> let the runtime shard across TensorCores.
            dimension_semantics=("parallel",),
        ),
        cost_estimate=cost,
    )(x, c_gathered)

    # loss = (sum_b clip(d_b) + B*(C-1)*1e-12) / B
    #      =  sum(partials)/B + (C-1)*1e-12
    return jnp.sum(partials) / B + float(C - 1) * 1e-12


def center_loss_ref(x, labels, centers):
    """Pure-JAX reference mirroring the PyTorch module (full distmat form)."""
    B = x.shape[0]
    C = centers.shape[0]
    xf = x.astype(jnp.float32)
    cf = centers.astype(jnp.float32)
    distmat = (
        jnp.sum(xf * xf, axis=1, keepdims=True)
        + jnp.sum(cf * cf, axis=1, keepdims=True).T
        - 2.0 * xf @ cf.T
    )
    mask = (labels[:, None] == jnp.arange(C)[None, :]).astype(jnp.float32)
    return jnp.sum(jnp.clip(distmat * mask, 1e-12, 1.0e12)) / B


if __name__ == "__main__":
    num_classes = 10
    feat_dim = 32
    batch = 8

    key = jax.random.PRNGKey(0)
    k_cent, k_x, k_lab = jax.random.split(key, 3)

    # deterministic "parameter" init (torch.randn equivalent)
    centers = jax.random.normal(k_cent, (num_classes, feat_dim), dtype=jnp.float32)
    x = jax.random.normal(k_x, (batch, feat_dim), dtype=jnp.float32)
    labels = jax.random.randint(k_lab, (batch,), 0, num_classes, dtype=jnp.int32)

    loss = jax.block_until_ready(center_loss(x, labels, centers))
    loss_ref = jax.block_until_ready(center_loss_ref(x, labels, centers))

    # The kernel computes sum((x - c)^2) directly, which is more accurate than
    # the ||x||^2 + ||c||^2 - 2 x.c expansion used by the reference, so allow a
    # small fp-reordering tolerance.
    assert jnp.allclose(loss, loss_ref, rtol=1e-4, atol=1e-5), (loss, loss_ref)
    print("KERNEL_OK")
</pallas_src>

<mosaic_0001>
module attributes {stable_mosaic.version = 11 : i64} {
  func.func @_center_loss_tile_kernel(%arg0: i32, %arg1: memref<8x32xf32, #tpu.memory_space<vmem>>, %arg2: memref<8x32xf32, #tpu.memory_space<vmem>>, %arg3: memref<1x1xf32, #tpu.memory_space<vmem>>) attributes {dimension_semantics = [#tpu.dimension_semantics<parallel>], iteration_bounds = array<i64: 1>, scalar_prefetch = 0 : i64, scratch_operands = 0 : i64, tpu.core_type = #tpu.core_type<tc>, window_params = [{transform_indices = @transform_0, window_bounds = array<i64: 8, 32>}, {transform_indices = @transform_1, window_bounds = array<i64: 8, 32>}, {transform_indices = @transform_2, window_bounds = array<i64: 1, 1>}]} {
    %c0 = arith.constant 0 : index
    %c0_0 = arith.constant 0 : index
    %0 = vector.load %arg1[%c0, %c0_0] : memref<8x32xf32, #tpu.memory_space<vmem>>, vector<8x32xf32>
    %c0_1 = arith.constant 0 : index
    %c0_2 = arith.constant 0 : index
    %1 = vector.load %arg2[%c0_1, %c0_2] : memref<8x32xf32, #tpu.memory_space<vmem>>, vector<8x32xf32>
    %2 = arith.subf %0, %1 : vector<8x32xf32>
    %3 = arith.mulf %2, %2 : vector<8x32xf32>
    %cst = arith.constant dense<0.000000e+00> : vector<8xf32>
    %4 = vector.multi_reduction <add>, %3, %cst [1] : vector<8x32xf32> to vector<8xf32>
    %5 = vector.shape_cast %4 : vector<8xf32> to vector<8x1xf32>
    %cst_3 = arith.constant 9.99999996E-13 : f32
    %cst_4 = arith.constant 9.99999995E+11 : f32
    %6 = vector.broadcast %cst_3 : f32 to vector<8x1xf32>
    %7 = arith.maximumf %6, %5 : vector<8x1xf32>
    %8 = vector.broadcast %cst_4 : f32 to vector<8x1xf32>
    %9 = arith.minimumf %8, %7 : vector<8x1xf32>
    %c8_i32 = arith.constant 8 : i32
    %10 = arith.muli %arg0, %c8_i32 : i32
    %11 = tpu.iota {dimensions = array<i32: 0>} : vector<8x1xi32>
    %12 = vector.broadcast %10 : i32 to vector<8x1xi32>
    %13 = arith.addi %12, %11 : vector<8x1xi32>
    %c8_i32_5 = arith.constant 8 : i32
    %14 = vector.broadcast %c8_i32_5 : i32 to vector<8x1xi32>
    %15 = arith.cmpi slt, %13, %14 : vector<8x1xi32>
    %cst_6 = arith.constant 0.000000e+00 : f32
    %16 = vector.broadcast %cst_6 : f32 to vector<8x1xf32>
    %17 = arith.select %15, %9, %16 : vector<8x1xi1>, vector<8x1xf32>
    %18 = vector.shape_cast %17 : vector<8x1xf32> to vector<1x8x1xf32>
    %cst_7 = arith.constant dense<0.000000e+00> : vector<1xf32>
    %19 = vector.multi_reduction <add>, %18, %cst_7 [1, 2] : vector<1x8x1xf32> to vector<1xf32>
    %20 = vector.shape_cast %19 : vector<1xf32> to vector<1x1x1xf32>
    %21 = vector.extract %20[0, 0, 0] : f32 from vector<1x1x1xf32>
    %22 = vector.broadcast %21 : f32 to vector<1x1xf32>
    %c0_8 = arith.constant 0 : index
    %c0_9 = arith.constant 0 : index
    %23 = vector.load %arg3[%c0_8, %c0_9] : memref<1x1xf32, #tpu.memory_space<vmem>>, vector<1x1xf32>
    tpu.vector_store %arg3[%c0_8, %c0_9], %22 {strides = array<i32>} : memref<1x1xf32, #tpu.memory_space<vmem>>, vector<1x1xf32>,
    return
  }
  func.func @transform_0(%arg0: i32) -> (i32, i32) {
    %c0_i32 = arith.constant 0 : i32
    %c0_i32_0 = arith.constant 0 : i32
    return %arg0, %c0_i32 : i32, i32
  }
  func.func @transform_1(%arg0: i32) -> (i32, i32) {
    %c0_i32 = arith.constant 0 : i32
    %c0_i32_0 = arith.constant 0 : i32
    return %arg0, %c0_i32 : i32, i32
  }
  func.func @transform_2(%arg0: i32) -> (i32, i32) {
    %c0_i32 = arith.constant 0 : i32
    %c0_i32_0 = arith.constant 0 : i32
    return %arg0, %c0_i32 : i32, i32
  }
}

</mosaic_0001>

<bundles_post_ra>
// kernel: tpu_custom_call.1
= control target key start
LH: loop header
LB: loop body
LE: loop exit
PB: predicated region body
PF: predicated region fallthrough
CT: control target
= control target key end

     0   :  { %7 = vsyncpa [#allocation3], 0  ;;  %s214_s0 = inlined_call_operand.hbm [shape: f32[8,32], index: 0, kind: input, shape index: {}]   ;;  %s215_s1 = inlined_call_operand.hbm [shape: f32[8,32], index: 1, kind: input, shape index: {}]   ;;  %s216_s2 = inlined_call_operand.hbm [shape: f32[1,1], index: 2, kind: output, shape index: {}]  }
   0x1   :  { %8 = vsyncpa [#allocation6], 0 }
   0x2   :  { %9 = vsyncpa [#allocation4], 0  ;;  %s160_s9 = smov [#allocation2]   ;;  %s161_s11 = smov [#allocation5]  }
   0x3   :  { %s16_s10 = sshll.u32 %s160_s9, 4  ;;  %s26_s12 = sshll.u32 %s161_s11, 4  ;;  %s17_s10 = int_to_ptr.vmem [resolvable:$true] %s16_s10  ;;  %s27_s12 = int_to_ptr.vmem [resolvable:$true] %s26_s12 }
   0x4   :  { %s88_s15 = scalar_lea.hbm %s214_s0, 128 }
   0x5   :  { %p89_p0 = scmp.ne.s32.totalorder %s214_s0, %s88_s15  ;;  %p92_p1 = scmp.lt.u32.totalorder %s88_s15, %s214_s0 }
   0x7   :  { %p94_p2 = pnand %p92_p1, %p89_p0 }
   0x9   :  { %97 = shalt.err (!%p94_p2)
}
   0xa   :  { %s98_s20 = scalar_lea.vmem %s17_s10, 128  ;;  %p103_p4 = scmp.lt.s32.totalorder %s17_s10, %s17_s10 }
   0xb   :  { %p99_p3 = scmp.ne.s32.totalorder %s17_s10, %s98_s20  ;;  %p104_p5 = scmp.lt.s32.totalorder %s98_s20, %s98_s20 }
   0xd   :  { %p105_p6 = por %p104_p5, %p103_p4 }
   0xf   :  { %p106_p7 = pnand %p105_p6, %p99_p3 }
  0x11   :  { %109 = shalt.err (!%p106_p7)
}
  0x12   :  { %19 = dma.hbm_to_vmem [thread:$0]  %s214_s0, 128, %s17_s10, [#allocation3]  }
  0x13   :  { %s110_s25 = scalar_lea.hbm %s215_s1, 128 }
  0x14   :  { %p111_p8 = scmp.ne.s32.totalorder %s215_s1, %s110_s25  ;;  %p114_p9 = scmp.lt.u32.totalorder %s110_s25, %s215_s1 }
  0x16   :  { %p116_p10 = pnand %p114_p9, %p111_p8 }
  0x18   :  { %119 = shalt.err (!%p116_p10)
}
  0x19   :  { %s120_s30 = scalar_lea.vmem %s27_s12, 128  ;;  %p125_p12 = scmp.lt.s32.totalorder %s27_s12, %s27_s12 }
  0x1a   :  { %p121_p11 = scmp.ne.s32.totalorder %s27_s12, %s120_s30  ;;  %p126_p13 = scmp.lt.s32.totalorder %s120_s30, %s120_s30 }
  0x1c   :  { %p127_p0 = por %p126_p13, %p125_p12 }
  0x1e   :  { %p128_p1 = pnand %p127_p0, %p121_p11 }
  0x20   :  { %131 = shalt.err (!%p128_p1)
}
  0x21   :  { %29 = dma.hbm_to_vmem [thread:$0]  %s215_s1, 128, %s27_s12, [#allocation6]  }
  0x22   :  { %154 = dma.done.wait [#allocation3], 128  }
  0x23   :  { %155 = vsyncadd [#allocation3], 4294967168 }
  0x24   :  { %156 = dma.done.wait [#allocation6], 128  }
  0x25   :  { %157 = vsyncadd [#allocation6], 4294967168  ;;  %v36_v0 = vld [vmem:[#allocation2] sm:$0xff]  ;;  %v37_v1 = vld [vmem:[#allocation5] sm:$0xff]  ;;  %vm40_vm0 = vcmask 261120   ;;  %vm53_vm1 = vcmask 7168  }
  0x26   :  { %v38_v2 = vsub.f32 %v36_v0, %v37_v1  ;;  %s162_s1 = smov [#allocation7]   ;;  %vm65_vm2 = vcmask 0  }
  0x27   :  { %s73_s4 = sshll.u32 %s162_s1, 4  ;;  %s74_s4 = int_to_ptr.vmem [resolvable:$true] %s73_s4 }
  0x28   :  { %v39_v3 = vmul.f32 %v38_v2, %v38_v2  ;;  %s132_s6 = scalar_lea.vmem %s74_s4, 16  ;;  %s136_s7 = scalar_lea.vmem %s74_s4, 32 }
  0x29   :  { %p133_p2 = scmp.ne.s32.totalorder %s74_s4, %s132_s6  ;;  %p137_p3 = scmp.lt.s32.totalorder %s74_s4, %s74_s4 }
  0x2a   :  { %v41_v4 = vsel %vm40_vm0, %v39_v3, 0.0  ;;  %p138_p4 = scmp.lt.s32.totalorder %s136_s7, %s132_s6 }
  0x2b   :  { %42 = vadd.xlane.f32.xlu0 %v41_v4 }
  0x2c   :  { %p139_p5 = por %p138_p4, %p137_p3 }
  0x2e   :  { %p140_p6 = pnand %p139_p5, %p133_p2 }
  0xb8   :  { %v43_v5 = vpop.xlane.xlu0 %42 }
  0xb9   :  { %v44_v6 = vmax.f32 %v43_v5, 1e-12 }
  0xbb   :  { %v45_v7 = vmin.f32 %v44_v6, 1e+12 }
  0xbd   :  { %v54_v8 = vsel %vm53_vm1, %v45_v7, 0.0 }
  0xbe   :  { %55 = vadd.xlane.f32.xlu0 %v54_v8 }
 0x14b   :  { %v56_v9 = vpop.xlane.xlu0 %55 }
 0x14c   :  { %v57_v10 = vrot.slane %v56_v9, 4 }
 0x14e   :  { %v58_v11 = vadd.f32 %v57_v10, %v56_v9 }
 0x150   :  { %v59_v12 = vrot.slane %v58_v11, 2 }
 0x152   :  { %v60_v13 = vadd.f32 %v59_v12, %v58_v11 }
 0x154   :  { %v61_v14 = vrot.slane %v60_v13, 1 }
 0x156   :  { %v62_v15 = vadd.f32 %v61_v14, %v60_v13 }
 0x158   :  { %83 = vpush %v62_v15 }
 0x189   :  { %s84_s5 = spop %83 }
 0x18a   :  { %v64_v16 = vstv %s84_s5 }
 0x18b   :  { %66 = vst.msk [vmem:[#allocation7] sm:$0x1] %vm65_vm2, %v64_v16 }
 0x18c   :  { %143 = shalt.err (!%p140_p6)
}
 0x18d   :  { %s144_s10 = scalar_lea.hbm %s216_s2, 16 }
 0x18e   :  { %p145_p7 = scmp.ne.s32.totalorder %s216_s2, %s144_s10  ;;  %p148_p8 = scmp.lt.u32.totalorder %s144_s10, %s216_s2 }
 0x190   :  { %p150_p9 = pnand %p148_p8, %p145_p7 }
 0x192   :  { %153 = shalt.err (!%p150_p9)
}
 0x193   :  { %76 = dma.vmem_to_hbm [thread:$0]  %s74_s4, 16, %s216_s2, [#allocation4]  }
 0x194   :  { %158 = dma.done.wait [#allocation4], 16  }
 0x195   :  { %159 = vsyncadd [#allocation4], 4294967280 }
 0x196   :  { %80 = vsyncpa [#allocation3], 1 }
 0x197   :  { %81 = vsyncpa [#allocation6], 1 }
 0x198   :  { %82 = vsyncpa [#allocation4], 1 }

</bundles_post_ra>
